<compile_context>
chip_gen: v5e
topology: v5e:2x2
jax: 0.10.0
libtpu: 0.0.40
codegen_flags: <defaults>
</compile_context>

<pallas_src>
import jax
import jax.numpy as jnp
from jax import lax
from jax.experimental import pallas as pl
from jax.experimental.pallas import tpu as pltpu


def _node_transform_kernel(x_ref, wd_ref, wb_ref, bias_ref, a_ref, b_ref):
    # x: [TM, C_in] f32, wd/wb: [C_in, C_pad] bf16, bias: [1, C_pad] f32
    # A = x @ (W_top - W_bot) + b   (bias folded here),  B = x @ W_bot
    xb = x_ref[...].astype(jnp.bfloat16)            # bf16 MXU operands, f32 accum
    a_ref[...] = (jnp.dot(xb, wd_ref[...], preferred_element_type=jnp.float32)
                  + bias_ref[...])
    b_ref[...] = jnp.dot(xb, wb_ref[...], preferred_element_type=jnp.float32)


def _aggregate_kernel(eoff_ref, ecnt_ref,            # scalar-prefetch (SMEM)
                      tgt_ref, bsrc_ref, a_ref,      # VMEM inputs
                      o_ref):                        # VMEM output (doubles as accumulator)
    nt = pl.program_id(0)          # node tile
    et = pl.program_id(1)          # edge-block step within this node tile's range
    tn = o_ref.shape[0]            # node_tile
    neg_inf = jnp.float32(-jnp.inf)

    @pl.when(et == 0)
    def _init():
        # output block is resident across the edge axis -> use it as the accumulator
        o_ref[...] = jnp.full(o_ref.shape, neg_inf, dtype=o_ref.dtype)

    # Only edge blocks that overlap this node tile's (target-sorted) segment do work.
    @pl.when(et < ecnt_ref[nt])
    def _update():
        b = bsrc_ref[...]                             # [TE, C_pad] f32
        t = tgt_ref[...]                              # [TE, 1] int32 (sorted targets)
        base = nt * tn
        rows = []
        for i in range(tn):                           # static, unrolled: node_tile rows
            sel = jnp.where(t == base + i, b, neg_inf)            # [TE, C_pad]
            rows.append(jnp.max(sel, axis=0, keepdims=True))      # [1, C_pad]
        o_ref[...] = jnp.maximum(o_ref[...], jnp.concatenate(rows, axis=0))

    @pl.when(et == pl.num_programs(1) - 1)
    def _finalize():
        # ReLU(A + b + max B[src]); nodes with no incoming edges keep acc = -inf
        # so ReLU(-inf) = 0, matching scatter_('max') zero-fill. No degree array needed.
        o_ref[...] = jnp.maximum(a_ref[...] + o_ref[...], 0.0)


def graph_conv_edge(x, edge_index, weight, bias, *,
                    node_tile=8, edge_tile=128, mm_tile=128):
    """EdgeConv forward.  x: [N, C_in] f32, edge_index: [2, E] i32 (row0=src, row1=tgt),
    weight: [2*C_in, C_out] f32, bias: [C_out] f32  ->  [N, C_out] f32."""
    assert edge_index.shape[0] == 2
    assert mm_tile % node_tile == 0
    N, C_in = x.shape
    C_out = weight.shape[1]
    E = edge_index.shape[1]
    f32 = jnp.float32

    LANE = 128
    C_pad = pl.cdiv(C_out, LANE) * LANE          # lane-dense channel dim
    N_pad = pl.cdiv(N, mm_tile) * mm_tile
    E_pad = pl.cdiv(E, edge_tile) * edge_tile

    # --- weight split + zero-pad to C_pad (done once, tiny)
    w_top = weight[:C_in].astype(f32)
    w_bot = weight[C_in:].astype(f32)
    wd = jnp.zeros((C_in, C_pad), jnp.bfloat16).at[:, :C_out].set((w_top - w_bot).astype(jnp.bfloat16))
    wb = jnp.zeros((C_in, C_pad), jnp.bfloat16).at[:, :C_out].set(w_bot.astype(jnp.bfloat16))
    bias_pad = jnp.zeros((1, C_pad), f32).at[0, :C_out].set(bias.astype(f32))
    x_pad = jnp.zeros((N_pad, C_in), f32).at[:N].set(x.astype(f32))

    # --- kernel 1: per-node transform (MXU FLOPs are 2*N*C_in*C_out, not E*2*C_in*C_out)
    num_mt = N_pad // mm_tile
    A, B = pl.pallas_call(
        _node_transform_kernel,
        out_shape=(jax.ShapeDtypeStruct((N_pad, C_pad), f32),
                   jax.ShapeDtypeStruct((N_pad, C_pad), f32)),
        grid_spec=pltpu.PrefetchScalarGridSpec(
            num_scalar_prefetch=0,
            grid=(num_mt,),
            in_specs=[pl.BlockSpec((mm_tile, C_in), lambda i: (i, 0)),
                      pl.BlockSpec((C_in, C_pad), lambda i: (0, 0)),
                      pl.BlockSpec((C_in, C_pad), lambda i: (0, 0)),
                      pl.BlockSpec((1, C_pad), lambda i: (0, 0))],
            out_specs=[pl.BlockSpec((mm_tile, C_pad), lambda i: (i, 0)),
                       pl.BlockSpec((mm_tile, C_pad), lambda i: (i, 0))]),
        compiler_params=pltpu.CompilerParams(
            dimension_semantics=("parallel",),
            vmem_limit_bytes=32 * 1024 * 1024),
    )(x_pad, wd, wb, bias_pad)

    # --- glue: sort edges by target, pad with sentinel target (= N_pad, never matches)
    src = edge_index[0].astype(jnp.int32)
    tgt = edge_index[1].astype(jnp.int32)
    pad_e = E_pad - E
    src_p = jnp.concatenate([src, jnp.zeros((pad_e,), jnp.int32)])
    tgt_p = jnp.concatenate([tgt, jnp.full((pad_e,), N_pad, jnp.int32)])
    order = jnp.argsort(tgt_p)
    tgt_s = tgt_p[order]
    src_s = src_p[order]

    # TODO(synk): replace this wrapper-side gather with an in-kernel double-buffered
    # DMA gather (memory_space=pl.ANY + pltpu.make_async_copy driven by the sorted src
    # indices) so the [E, C_pad] source rows never round-trip through HBM.
    b_src = jnp.take(B, src_s, axis=0)                 # [E_pad, C_pad] f32
    tgt_col = tgt_s.reshape(E_pad, 1)                  # [E_pad, 1] int32 (column layout)

    # --- per-node-tile contiguous edge-block range over the target-sorted edge list
    num_nt = N_pad // node_tile
    num_eblk = E_pad // edge_tile
    tile_lo = jnp.arange(num_nt, dtype=jnp.int32) * node_tile
    starts = jnp.searchsorted(tgt_s, tile_lo, side='left')
    ends = jnp.searchsorted(tgt_s, tile_lo + node_tile, side='left')
    eoff = (starts // edge_tile).astype(jnp.int32)                           # first edge block
    ecnt = jnp.where(ends > starts,
                     (ends - 1) // edge_tile - starts // edge_tile + 1,
                     0).astype(jnp.int32)                                    # # of edge blocks
    # Static trip count for the edge axis (requires concrete edge_index here; pass a
    # static bound instead if this wrapper is wrapped in jit over edge_index).
    max_blk = max(int(jnp.max(ecnt)), 1)

    def _eblk(nt, et, eoff_ref, ecnt_ref):
        # clamp so skipped steps still map to a valid block (pl.when guards the compute)
        return jnp.minimum(eoff_ref[nt] + et, num_eblk - 1)

    out_padded = pl.pallas_call(
        _aggregate_kernel,
        out_shape=jax.ShapeDtypeStruct((N_pad, C_pad), f32),
        grid_spec=pltpu.PrefetchScalarGridSpec(
            num_scalar_prefetch=2,                      # eoff, ecnt -> SMEM
            grid=(num_nt, max_blk),                     # node tiles x edge blocks
            in_specs=[
                pl.BlockSpec((edge_tile, 1),
                             lambda nt, et, eo, ec: (_eblk(nt, et, eo, ec), 0)),
                pl.BlockSpec((edge_tile, C_pad),
                             lambda nt, et, eo, ec: (_eblk(nt, et, eo, ec), 0)),
                pl.BlockSpec((node_tile, C_pad), lambda nt, et, eo, ec: (nt, 0)),
            ],
            out_specs=pl.BlockSpec((node_tile, C_pad), lambda nt, et, eo, ec: (nt, 0)),
            scratch_shapes=[]),
        compiler_params=pltpu.CompilerParams(
            dimension_semantics=("parallel", "arbitrary"),
            vmem_limit_bytes=32 * 1024 * 1024),
    )(eoff, ecnt, tgt_col, b_src, A)

    return out_padded[:N, :C_out]


if __name__ == "__main__":
    key = jax.random.PRNGKey(0)
    N, C_in, C_out, K = 64, 8, 16, 5          # 64 nodes, k=5 incoming edges each

    k_x, k_w, k_b = jax.random.split(key, 3)
    x = jax.random.normal(k_x, (N, C_in), dtype=jnp.float32)

    # ring graph: node i receives edges from (i-1, ..., i-K) mod N
    nodes = jnp.arange(N, dtype=jnp.int32)
    src = jnp.concatenate([(nodes - d) % N for d in range(1, K + 1)])   # [E]
    tgt = jnp.concatenate([nodes for _ in range(K)])                    # [E]
    edge_index = jnp.stack([src, tgt], axis=0)                          # [2, E]

    # MLP([2*C_in, C_out], act='relu', bias=True) params, deterministic init
    weight = jax.random.normal(k_w, (2 * C_in, C_out), dtype=jnp.float32) * 0.1
    bias = jax.random.normal(k_b, (C_out,), dtype=jnp.float32) * 0.1

    out = graph_conv_edge(x, edge_index, weight, bias)
    out = jax.block_until_ready(out)

    # pure-JAX reference (exact f32 semantics of the original module)
    x_i = x[tgt]
    x_j = x[src]
    msg = jnp.maximum(jnp.concatenate([x_i, x_j - x_i], axis=1) @ weight + bias, 0.0)
    ref = jax.ops.segment_max(msg, tgt, num_segments=N)
    ref = jnp.where(jnp.isneginf(ref), 0.0, ref)

    assert out.shape == (N, C_out)
    # tolerance loosened vs. the f32 reference because MXU operands are cast to bf16
    assert jnp.allclose(out, ref, atol=2e-2, rtol=2e-2), float(jnp.max(jnp.abs(out - ref)))
    print("KERNEL_OK")
</pallas_src>

<mosaic_0001>
module attributes {stable_mosaic.version = 11 : i64} {
  func.func @_node_transform_kernel(%arg0: i32, %arg1: memref<128x8xf32, #tpu.memory_space<vmem>>, %arg2: memref<8x128xbf16, #tpu.memory_space<vmem>>, %arg3: memref<8x128xbf16, #tpu.memory_space<vmem>>, %arg4: memref<1x128xf32, #tpu.memory_space<vmem>>, %arg5: memref<128x128xf32, #tpu.memory_space<vmem>>, %arg6: memref<128x128xf32, #tpu.memory_space<vmem>>) attributes {dimension_semantics = [#tpu.dimension_semantics<parallel>], iteration_bounds = array<i64: 1>, scalar_prefetch = 0 : i64, scratch_operands = 0 : i64, tpu.core_type = #tpu.core_type<tc>, window_params = [{transform_indices = @transform_0, window_bounds = array<i64: 128, 8>}, {pipeline_mode = #tpu.pipeline_mode<synchronous>, transform_indices = @transform_1, window_bounds = array<i64: 8, 128>}, {pipeline_mode = #tpu.pipeline_mode<synchronous>, transform_indices = @transform_2, window_bounds = array<i64: 8, 128>}, {pipeline_mode = #tpu.pipeline_mode<synchronous>, transform_indices = @transform_3, window_bounds = array<i64: 1, 128>}, {transform_indices = @transform_4, window_bounds = array<i64: 128, 128>}, {transform_indices = @transform_5, window_bounds = array<i64: 128, 128>}]} {
    %c0 = arith.constant 0 : index
    %c0_0 = arith.constant 0 : index
    %0 = vector.load %arg1[%c0, %c0_0] : memref<128x8xf32, #tpu.memory_space<vmem>>, vector<128x8xf32>
    %1 = arith.truncf %0 : vector<128x8xf32> to vector<128x8xbf16>
    %c0_1 = arith.constant 0 : index
    %c0_2 = arith.constant 0 : index
    %2 = vector.load %arg2[%c0_1, %c0_2] : memref<8x128xbf16, #tpu.memory_space<vmem>>, vector<8x128xbf16>
    %cst = arith.constant dense<0.000000e+00> : vector<128x128xf32>
    %3 = tpu.matmul %1, %2, %cst {dimension_numbers = #tpu.dot_dimension_numbers<[1], [0], [0], [1], [0, 0, 1, 1], [], []>} : vector<128x8xbf16>, vector<8x128xbf16>, vector<128x128xf32> -> vector<128x128xf32>
    %c0_3 = arith.constant 0 : index
    %c0_4 = arith.constant 0 : index
    %4 = vector.load %arg4[%c0_3, %c0_4] : memref<1x128xf32, #tpu.memory_space<vmem>>, vector<1x128xf32>
    %5 = vector.broadcast %4 : vector<1x128xf32> to vector<128x128xf32>
    %6 = arith.addf %3, %5 : vector<128x128xf32>
    %c0_5 = arith.constant 0 : index
    %c0_6 = arith.constant 0 : index
    %7 = vector.load %arg5[%c0_5, %c0_6] : memref<128x128xf32, #tpu.memory_space<vmem>>, vector<128x128xf32>
    tpu.vector_store %arg5[%c0_5, %c0_6], %6 {strides = array<i32>} : memref<128x128xf32, #tpu.memory_space<vmem>>, vector<128x128xf32>,
    %c0_7 = arith.constant 0 : index
    %c0_8 = arith.constant 0 : index
    %8 = vector.load %arg3[%c0_7, %c0_8] : memref<8x128xbf16, #tpu.memory_space<vmem>>, vector<8x128xbf16>
    %cst_9 = arith.constant dense<0.000000e+00> : vector<128x128xf32>
    %9 = tpu.matmul %1, %8, %cst_9 {dimension_numbers = #tpu.dot_dimension_numbers<[1], [0], [0], [1], [0, 0, 1, 1], [], []>} : vector<128x8xbf16>, vector<8x128xbf16>, vector<128x128xf32> -> vector<128x128xf32>
    %c0_10 = arith.constant 0 : index
    %c0_11 = arith.constant 0 : index
    %10 = vector.load %arg6[%c0_10, %c0_11] : memref<128x128xf32, #tpu.memory_space<vmem>>, vector<128x128xf32>
    tpu.vector_store %arg6[%c0_10, %c0_11], %9 {strides = array<i32>} : memref<128x128xf32, #tpu.memory_space<vmem>>, vector<128x128xf32>,
    return
  }
  func.func @transform_0(%arg0: i32) -> (i32, i32) {
    %c0_i32 = arith.constant 0 : i32
    %c0_i32_0 = arith.constant 0 : i32
    return %arg0, %c0_i32 : i32, i32
  }
  func.func @transform_1(%arg0: i32) -> (i32, i32) {
    %c0_i32 = arith.constant 0 : i32
    %c0_i32_0 = arith.constant 0 : i32
    %c0_i32_1 = arith.constant 0 : i32
    return %c0_i32, %c0_i32_0 : i32, i32
  }
  func.func @transform_2(%arg0: i32) -> (i32, i32) {
    %c0_i32 = arith.constant 0 : i32
    %c0_i32_0 = arith.constant 0 : i32
    %c0_i32_1 = arith.constant 0 : i32
    return %c0_i32, %c0_i32_0 : i32, i32
  }
  func.func @transform_3(%arg0: i32) -> (i32, i32) {
    %c0_i32 = arith.constant 0 : i32
    %c0_i32_0 = arith.constant 0 : i32
    %c0_i32_1 = arith.constant 0 : i32
    return %c0_i32, %c0_i32_0 : i32, i32
  }
  func.func @transform_4(%arg0: i32) -> (i32, i32) {
    %c0_i32 = arith.constant 0 : i32
    %c0_i32_0 = arith.constant 0 : i32
    return %arg0, %c0_i32 : i32, i32
  }
  func.func @transform_5(%arg0: i32) -> (i32, i32) {
    %c0_i32 = arith.constant 0 : i32
    %c0_i32_0 = arith.constant 0 : i32
    return %arg0, %c0_i32 : i32, i32
  }
}

</mosaic_0001>

<bundles_post_ra>
// kernel: tpu_custom_call.1
= control target key start
LH: loop header
LB: loop body
LE: loop exit
PB: predicated region body
PF: predicated region fallthrough
CT: control target
= control target key end

     0   :  { %11 = vsyncpa [#allocation3], 0  ;;  %vm76_vm0 = vcmask 1043456   ;;  %vm51_vm1 = vcmask 64512   ;;  %s456_s0 = inlined_call_operand.vmem [shape: f32[128,8], index: 0, kind: input, shape index: {}]   ;;  %s457_s1 = inlined_call_operand.vmem [shape: bf16[8,128], index: 1, kind: input, shape index: {}]   ;;  %s458_s2 = inlined_call_operand.vmem [shape: bf16[8,128], index: 2, kind: input, shape index: {}]   ;;  %s459_s3 = inlined_call_operand.vmem [shape: f32[1,128], index: 3, kind: input, shape index: {}]   ;;  %s460_s4 = inlined_call_operand.hbm [shape: f32[128,128], index: 4, kind: output, shape index: {0}]   ;;  %s461_s5 = inlined_call_operand.hbm [shape: f32[128,128], index: 5, kind: output, shape index: {1}]  }
   0x1   :  { %v46_v0 = vld [vmem:[%s457_s1] sm:$0xf]  ;;  %v23_v5 = vld [vmem:[%s456_s0 + $0x8] sm:$0xff] }
   0x2   :  { %v145_v1 = vld [vmem:[%s458_s2] sm:$0xf]  ;;  %v78_v3 = vsel %vm76_vm0, %v46_v0, 0  ;;  %v31_v7 = vld [vmem:[%s456_s0 + $0x48] sm:$0xff] }
   0x3   :  { %v22_v2 = vld [vmem:[%s456_s0] sm:$0xff]  ;;  %v147_v4 = vsel %vm76_vm0, %v145_v1, 0  ;;  %87 = vmatpush.bf16.msra.mxu0 %v78_v3  ;;  %266 = vmatpush.bf16.msra.mxu2 %v78_v3 }
   0x4   :  { %v30_v6 = vld [vmem:[%s456_s0 + $0x40] sm:$0xff]  ;;  %v38_v8 = vpack.c.bf16 %v23_v5, %v22_v2  ;;  %156 = vmatpush.bf16.msra.mxu1 %v147_v4  ;;  %267 = vmatpush.bf16.msra.mxu3 %v147_v4 }
   0x5   :  { %v42_v9 = vpack.c.bf16 %v31_v7, %v30_v6 }
   0x6   :  { %250 = vmatmul.msk.bf16.vlgmr.msra.gmra.mxu0 %vm51_vm1, %v38_v8 }
   0x7   :  { %254 = vmatmul.msk.bf16.vlgmr.msra.gmra.mxu2 %vm51_vm1, %v42_v9 }
   0x8   :  { %12 = vsyncpa [#allocation5], 0  ;;  %258 = vmatmul.msk.bf16.vlgmr.msra.gmra.mxu1 %vm51_vm1, %v38_v8  ;;  %262 = vmatmul.msk.bf16.vlgmr.msra.gmra.mxu3 %vm51_vm1, %v42_v9  ;;  %v24_v10 = vld [vmem:[%s456_s0 + $0x10] sm:$0xff]  ;;  %v25_v11 = vld [vmem:[%s456_s0 + $0x18] sm:$0xff]  ;;  %s233_s29 = sshll.u32 %s461_s5, 4  ;;  %s326_s30 = smov [#allocation2]   ;;  %s234_s29 = int_to_ptr.hbm [resolvable:$true] %s233_s29 }
   0x9   :  { %v32_v12 = vld [vmem:[%s456_s0 + $0x50] sm:$0xff]  ;;  %v33_v13 = vld [vmem:[%s456_s0 + $0x58] sm:$0xff]  ;;  %v39_v14 = vpack.c.bf16 %v25_v11, %v24_v10  ;;  %v26_v16 = vld [vmem:[%s456_s0 + $0x20] sm:$0xff]  ;;  %s218_s6 = sshll.u32 %s326_s30, 4  ;;  %s220_s9 = sshll.u32 %s460_s4, 4  ;;  %s219_s6 = int_to_ptr.vmem [resolvable:$true] %s218_s6  ;;  %s221_s9 = int_to_ptr.hbm [resolvable:$true] %s220_s9 }
   0xa   :  { %v43_v15 = vpack.c.bf16 %v33_v13, %v32_v12  ;;  %v27_v17 = vld [vmem:[%s456_s0 + $0x28] sm:$0xff]  ;;  %v34_v18 = vld [vmem:[%s456_s0 + $0x60] sm:$0xff]  ;;  %v28_v22 = vld [vmem:[%s456_s0 + $0x30] sm:$0xff]  ;;  %s327_s10 = smov 128   ;;  %s328_s11 = smov 8  }
   0xb   :  { %v35_v19 = vld [vmem:[%s456_s0 + $0x68] sm:$0xff]  ;;  %v40_v20 = vpack.c.bf16 %v27_v17, %v26_v16  ;;  %v29_v23 = vld [vmem:[%s456_s0 + $0x38] sm:$0xff]  ;;  %v36_v24 = vld [vmem:[%s456_s0 + $0x70] sm:$0xff] }
   0xc   :  { %v44_v21 = vpack.c.bf16 %v35_v19, %v34_v18  ;;  %v37_v25 = vld [vmem:[%s456_s0 + $0x78] sm:$0xff]  ;;  %v41_v26 = vpack.c.bf16 %v29_v23, %v28_v22  ;;  %v432_v28 = vld [vmem:[%s459_s3] ss:$0 sm:$0xff]  ;;  %s325_s0 = smov [#allocation4]  }
   0xd   :  { %v45_v27 = vpack.c.bf16 %v37_v25, %v36_v24  ;;  %s231_s3 = sshll.u32 %s325_s0, 4  ;;  %s232_s3 = int_to_ptr.vmem [resolvable:$true] %s231_s3 }
  0x16   :  { %251 = vmatmul.msk.bf16.gmra.mxu0 %vm51_vm1, %v39_v14 }
  0x17   :  { %255 = vmatmul.msk.bf16.gmra.mxu2 %vm51_vm1, %v43_v15 }
  0x18   :  { %259 = vmatmul.msk.bf16.gmra.mxu1 %vm51_vm1, %v39_v14  ;;  %263 = vmatmul.msk.bf16.gmra.mxu3 %vm51_vm1, %v43_v15 }
  0x26   :  { %252 = vmatmul.msk.bf16.gmra.mxu0 %vm51_vm1, %v40_v20 }
  0x27   :  { %256 = vmatmul.msk.bf16.gmra.mxu2 %vm51_vm1, %v44_v21 }
  0x28   :  { %260 = vmatmul.msk.bf16.gmra.mxu1 %vm51_vm1, %v40_v20  ;;  %264 = vmatmul.msk.bf16.gmra.mxu3 %vm51_vm1, %v44_v21 }
  0x36   :  { %253 = vmatmul.msk.bf16.gmra.mxu0 %vm51_vm1, %v41_v26 }
  0x37   :  { %257 = vmatmul.msk.bf16.gmra.mxu2 %vm51_vm1, %v45_v27 }
  0x38   :  { %261 = vmatmul.msk.bf16.gmra.mxu1 %vm51_vm1, %v41_v26  ;;  %265 = vmatmul.msk.bf16.gmra.mxu3 %vm51_vm1, %v45_v27 }
  0x83   :  { %v89_v29 = vpop.f32.mrf.mxu0 }
  0x84   :  { %v90_v30 = vadd.f32 %v432_v28, %v89_v29 }
  0x85   :  { %v158_v31 = vpop.f32.mrf.mxu1 }
  0x86   :  { %198 = vst [vmem:[#allocation4] sm:$0xff] %v158_v31 }
  0x87   :  { %129 = vst [vmem:[#allocation2] sm:$0xff] %v90_v30 }
  0x8a   :  { %v109_v32 = vpop.f32.mrf.mxu2 }
  0x8b   :  { %v110_v33 = vadd.f32 %v432_v28, %v109_v32  ;;  %v178_v34 = vpop.f32.mrf.mxu3  ;;  %v91_v35 = vpop.f32.mrf.mxu0 }
  0x8c   :  { %206 = vst [vmem:[#allocation4 + $0x40] sm:$0xff] %v178_v34  ;;  %v92_v36 = vadd.f32 %v432_v28, %v91_v35 }
  0x8d   :  { %137 = vst [vmem:[#allocation2 + $0x40] sm:$0xff] %v110_v33  ;;  %v160_v37 = vpop.f32.mrf.mxu1 }
  0x8e   :  { %199 = vst [vmem:[#allocation4 + $0x8] sm:$0xff] %v160_v37 }
  0x8f   :  { %130 = vst [vmem:[#allocation2 + $0x8] sm:$0xff] %v92_v36 }
  0x92   :  { %v111_v38 = vpop.f32.mrf.mxu2 }
  0x93   :  { %v112_v39 = vadd.f32 %v432_v28, %v111_v38  ;;  %v180_v40 = vpop.f32.mrf.mxu3  ;;  %v94_v41 = vpop.f32.mrf.mxu0 }
  0x94   :  { %207 = vst [vmem:[#allocation4 + $0x48] sm:$0xff] %v180_v40  ;;  %v95_v42 = vadd.f32 %v432_v28, %v94_v41 }
  0x95   :  { %138 = vst [vmem:[#allocation2 + $0x48] sm:$0xff] %v112_v39  ;;  %v163_v43 = vpop.f32.mrf.mxu1 }
  0x96   :  { %200 = vst [vmem:[#allocation4 + $0x10] sm:$0xff] %v163_v43 }
  0x97   :  { %131 = vst [vmem:[#allocation2 + $0x10] sm:$0xff] %v95_v42 }
  0x9a   :  { %v114_v44 = vpop.f32.mrf.mxu2 }
  0x9b   :  { %v115_v45 = vadd.f32 %v432_v28, %v114_v44  ;;  %v183_v46 = vpop.f32.mrf.mxu3  ;;  %v96_v47 = vpop.f32.mrf.mxu0 }
  0x9c   :  { %208 = vst [vmem:[#allocation4 + $0x50] sm:$0xff] %v183_v46  ;;  %v97_v48 = vadd.f32 %v432_v28, %v96_v47 }
  0x9d   :  { %139 = vst [vmem:[#allocation2 + $0x50] sm:$0xff] %v115_v45  ;;  %v165_v49 = vpop.f32.mrf.mxu1 }
  0x9e   :  { %201 = vst [vmem:[#allocation4 + $0x18] sm:$0xff] %v165_v49 }
  0x9f   :  { %132 = vst [vmem:[#allocation2 + $0x18] sm:$0xff] %v97_v48 }
  0xa2   :  { %v116_v50 = vpop.f32.mrf.mxu2 }
  0xa3   :  { %v117_v51 = vadd.f32 %v432_v28, %v116_v50  ;;  %v185_v52 = vpop.f32.mrf.mxu3  ;;  %v99_v53 = vpop.f32.mrf.mxu0 }
  0xa4   :  { %209 = vst [vmem:[#allocation4 + $0x58] sm:$0xff] %v185_v52  ;;  %v100_v54 = vadd.f32 %v432_v28, %v99_v53 }
  0xa5   :  { %140 = vst [vmem:[#allocation2 + $0x58] sm:$0xff] %v117_v51  ;;  %v168_v55 = vpop.f32.mrf.mxu1 }
  0xa6   :  { %202 = vst [vmem:[#allocation4 + $0x20] sm:$0xff] %v168_v55 }
  0xa7   :  { %133 = vst [vmem:[#allocation2 + $0x20] sm:$0xff] %v100_v54 }
  0xaa   :  { %v119_v56 = vpop.f32.mrf.mxu2 }
  0xab   :  { %v120_v57 = vadd.f32 %v432_v28, %v119_v56  ;;  %v188_v58 = vpop.f32.mrf.mxu3  ;;  %v101_v59 = vpop.f32.mrf.mxu0 }
  0xac   :  { %210 = vst [vmem:[#allocation4 + $0x60] sm:$0xff] %v188_v58  ;;  %v102_v60 = vadd.f32 %v432_v28, %v101_v59 }
  0xad   :  { %141 = vst [vmem:[#allocation2 + $0x60] sm:$0xff] %v120_v57  ;;  %v170_v61 = vpop.f32.mrf.mxu1 }
  0xae   :  { %203 = vst [vmem:[#allocation4 + $0x28] sm:$0xff] %v170_v61 }
  0xaf   :  { %134 = vst [vmem:[#allocation2 + $0x28] sm:$0xff] %v102_v60 }
  0xb2   :  { %v121_v62 = vpop.f32.mrf.mxu2 }
  0xb3   :  { %v122_v63 = vadd.f32 %v432_v28, %v121_v62  ;;  %v190_v0 = vpop.f32.mrf.mxu3  ;;  %v104_v1 = vpop.f32.mrf.mxu0 }
  0xb4   :  { %211 = vst [vmem:[#allocation4 + $0x68] sm:$0xff] %v190_v0  ;;  %v105_v2 = vadd.f32 %v432_v28, %v104_v1 }
  0xb5   :  { %142 = vst [vmem:[#allocation2 + $0x68] sm:$0xff] %v122_v63  ;;  %v173_v3 = vpop.f32.mrf.mxu1 }
  0xb6   :  { %204 = vst [vmem:[#allocation4 + $0x30] sm:$0xff] %v173_v3 }
  0xb7   :  { %135 = vst [vmem:[#allocation2 + $0x30] sm:$0xff] %v105_v2 }
  0xba   :  { %v124_v4 = vpop.f32.mrf.mxu2 }
  0xbb   :  { %v125_v5 = vadd.f32 %v432_v28, %v124_v4  ;;  %v193_v6 = vpop.f32.mrf.mxu3  ;;  %v106_v7 = vpop.f32.mrf.mxu0 }
  0xbc   :  { %212 = vst [vmem:[#allocation4 + $0x70] sm:$0xff] %v193_v6  ;;  %v107_v8 = vadd.f32 %v432_v28, %v106_v7 }
  0xbd   :  { %143 = vst [vmem:[#allocation2 + $0x70] sm:$0xff] %v125_v5  ;;  %v175_v9 = vpop.f32.mrf.mxu1 }
  0xbe   :  { %205 = vst [vmem:[#allocation4 + $0x38] sm:$0xff] %v175_v9 }
  0xbf   :  { %136 = vst [vmem:[#allocation2 + $0x38] sm:$0xff] %v107_v8 }
  0xc2   :  { %v126_v10 = vpop.f32.mrf.mxu2 }
  0xc3   :  { %v127_v11 = vadd.f32 %v432_v28, %v126_v10  ;;  %v195_v12 = vpop.f32.mrf.mxu3 }
  0xc4   :  { %213 = vst [vmem:[#allocation4 + $0x78] sm:$0xff] %v195_v12 }
  0xc5   :  { %144 = vst [vmem:[#allocation2 + $0x78] sm:$0xff] %v127_v11  ;;  %239 = dma.vmem_to_hbm [thread:$0]  %s232_s3, 2048, %s234_s29, [#allocation5], %s327_s10, %s327_s10, %s328_s11  }
  0xc6   :  { %226 = dma.vmem_to_hbm [thread:$0]  %s219_s6, 2048, %s221_s9, [#allocation3], %s327_s10, %s327_s10, %s328_s11  }
  0xc7   :  { %321 = dma.done.wait [#allocation3], 2048  }
  0xc8   :  { %322 = vsyncadd [#allocation3], 4294965248 }
  0xc9   :  { %323 = dma.done.wait [#allocation5], 2048  }
  0xca   :  { %324 = vsyncadd [#allocation5], 4294965248 }
  0xcb   :  { %248 = vsyncpa [#allocation3], 1 }
  0xcc   :  { %249 = vsyncpa [#allocation5], 1 }

</bundles_post_ra>
